<compile_context>
chip_gen: v7x
topology: tpu7x:2x2x1
jax: 0.10.0
libtpu: 0.0.40
codegen_flags: <defaults>
</compile_context>

<pallas_src>
import functools

import jax
import jax.numpy as jnp
import numpy as np
from jax import lax
from jax.experimental import pallas as pl
from jax.experimental.pallas import tpu as pltpu

# Hard-coded constant from the PyTorch module (divisor is 471 regardless of
# the actual number of rows in q_t — reproduced exactly).
_N_CONST = 471.0


def _kernel_static(q_ref, th_ref, u_ref, z_ref, out_ref, *, rho, c0, s):
    """One (TP, TM) output tile; rho/c0/s baked in as trace-time constants."""
    # (S, TP)^T @ (S, TM) -> (TP, TM), f32 accumulate on the MXU
    # (transposed-LHS matmul: no wrapper-side transpose / extra HBM copy).
    qt = lax.dot_general(
        q_ref[...], th_ref[...],
        dimension_numbers=(((0,), (0,)), ((), ())),
        preferred_element_type=jnp.float32,
    )
    u = u_ref[...].astype(jnp.float32)
    z = z_ref[...].astype(jnp.float32)
    out_ref[...] = (u + rho * z + (s * qt + c0)).astype(out_ref.dtype)


def _kernel_smem(scal_ref, q_ref, th_ref, u_ref, z_ref, out_ref):
    """Same math, scalars (rho, c0, s) come from an SMEM slab (traced params)."""
    rho = scal_ref[0]
    c0 = scal_ref[1]
    s = scal_ref[2]
    qt = lax.dot_general(
        q_ref[...], th_ref[...],
        dimension_numbers=(((0,), (0,)), ((), ())),
        preferred_element_type=jnp.float32,
    )
    u = u_ref[...].astype(jnp.float32)
    z = z_ref[...].astype(jnp.float32)
    out_ref[...] = (u + rho * z + (s * qt + c0)).astype(out_ref.dtype)


def _is_static_scalar(x):
    if isinstance(x, (bool, int, float, np.floating, np.integer)):
        return True
    if isinstance(x, np.ndarray) and x.ndim == 0:
        return True
    return False


def u_update_layer(MFSIT_data, q_t, w, rho, *, tp=512, tm=1024):
    """JAX/Pallas equivalent of u_Update_Layer.forward (functional update).

    q_t: (S, P), theta: (S, M), u/z: (P, M).  Returns (new_MFSIT_data, q_t).
    """
    u = MFSIT_data["u"]
    theta = MFSIT_data["theta"]
    z = MFSIT_data["z"]

    S, P = q_t.shape
    S2, M = theta.shape
    assert S == S2 and u.shape == (P, M) and z.shape == (P, M)

    # ---- tile sizes -------------------------------------------------------
    # q_t blocks are (S, TP): TP sits on the lane axis, so it must either be a
    # multiple of 128 or cover the whole P extent.  Same rule for TM on M.
    if P <= tp:
        TP = P
    else:
        TP = max(128, (tp // 128) * 128)

    # v7x VMEM cap: keep the double-buffered working set
    #   2 * 4B * (S*TP + S*TM + 3*TP*TM)
    # under ~24 MiB (32 MiB scoped VMEM on v7x; plenty of slack on v5e/v6e).
    budget = 24 * 1024 * 1024
    cap = (budget // 8 - S * TP) // (S + 3 * TP)
    tm_eff = max(128, (min(tm, int(cap)) // 128) * 128)
    TM = M if M <= tm_eff else tm_eff

    p_tiles = pl.cdiv(P, TP)
    m_tiles = pl.cdiv(M, TM)

    # ---- grid order: hold the bigger matmul operand resident over the inner
    # grid axis (theta when M >= P), so it is fetched from HBM only once.
    m_outer = M >= P
    if m_outer:
        grid = (m_tiles, p_tiles)

        def _pi(a, b):
            return b

        def _mj(a, b):
            return a
    else:
        grid = (p_tiles, m_tiles)

        def _pi(a, b):
            return a

        def _mj(a, b):
            return b

    q_spec = pl.BlockSpec((S, TP), lambda a, b: (0, _pi(a, b)))
    th_spec = pl.BlockSpec((S, TM), lambda a, b: (0, _mj(a, b)))
    uz_spec = pl.BlockSpec((TP, TM), lambda a, b: (_pi(a, b), _mj(a, b)))
    out_spec = pl.BlockSpec((TP, TM), lambda a, b: (_pi(a, b), _mj(a, b)))

    # ---- advisory cost estimate (counts redundant small-operand re-fetches).
    def _isz(x):
        return jnp.dtype(x.dtype).itemsize

    if m_outer:
        q_passes, th_passes = m_tiles, 1
    else:
        q_passes, th_passes = 1, p_tiles
    cost = pl.CostEstimate(
        flops=2 * S * P * M,
        transcendentals=0,
        bytes_accessed=int(q_passes * S * P * _isz(q_t)
                           + th_passes * S * M * _isz(theta)
                           + 3 * P * M * _isz(u)),
    )
    cparams = pltpu.CompilerParams(
        dimension_semantics=("parallel", "parallel"),
        vmem_limit_bytes=32 * 1024 * 1024,
    )

    if _is_static_scalar(w) and _is_static_scalar(rho):
        # Fold the scalars at trace time: no SMEM slab, no per-step scalar loads.
        rho_c = float(rho)
        kernel = functools.partial(
            _kernel_static, rho=rho_c, c0=-rho_c * float(w), s=-rho_c / _N_CONST)
        out = pl.pallas_call(
            kernel,
            out_shape=jax.ShapeDtypeStruct((P, M), u.dtype),
            grid=grid,
            in_specs=[q_spec, th_spec, uz_spec, uz_spec],
            out_specs=out_spec,
            compiler_params=cparams,
            cost_estimate=cost,
        )(q_t, theta, u, z)
    else:
        # Traced / learnable scalars: fold once here, ship via SMEM.
        rho_f = jnp.asarray(rho, dtype=jnp.float32)
        w_f = jnp.asarray(w, dtype=jnp.float32)
        scalars = jnp.stack([rho_f, -rho_f * w_f, -rho_f / _N_CONST])  # (3,) f32
        out = pl.pallas_call(
            _kernel_smem,
            out_shape=jax.ShapeDtypeStruct((P, M), u.dtype),
            grid=grid,
            in_specs=[pl.BlockSpec(memory_space=pltpu.MemorySpace.SMEM),
                      q_spec, th_spec, uz_spec, uz_spec],
            out_specs=out_spec,
            compiler_params=cparams,
            cost_estimate=cost,
        )(scalars, q_t, theta, u, z)

    new_data = dict(MFSIT_data)
    new_data["u"] = out
    return new_data, q_t


if __name__ == "__main__":
    key = jax.random.PRNGKey(0)

    def make_case(seed, S, P, M, dtype=jnp.float32):
        ks = jax.random.split(jax.random.fold_in(key, seed), 4)
        q_t = jax.random.normal(ks[0], (S, P), dtype=jnp.float32).astype(dtype)
        theta = jax.random.normal(ks[1], (S, M), dtype=jnp.float32).astype(dtype)
        u = jax.random.normal(ks[2], (P, M), dtype=jnp.float32).astype(dtype)
        z = jax.random.normal(ks[3], (P, M), dtype=jnp.float32).astype(dtype)
        return q_t, {"u": u, "theta": theta, "z": z}

    def reference(data, q_t, w, rho):
        q32 = np.asarray(q_t, dtype=np.float32)
        th32 = np.asarray(data["theta"], dtype=np.float32)
        u32 = np.asarray(data["u"], dtype=np.float32)
        z32 = np.asarray(data["z"], dtype=np.float32)
        b = w + (1.0 / _N_CONST) * (q32.T @ th32)
        return u32 + rho * (z32 - b)

    def check(seed, S, P, M, *, w, rho, dtype=jnp.float32, tp=512, tm=1024,
              rtol=1e-5, atol=1e-5):
        q_t, data = make_case(seed, S, P, M, dtype)
        new_data, q_out = u_update_layer(data, q_t, w, rho, tp=tp, tm=tm)
        result = np.asarray(jax.block_until_ready(new_data["u"]), dtype=np.float32)
        ref = reference(data, q_t, float(w), float(rho))
        assert q_out.shape == q_t.shape
        np.testing.assert_allclose(result, ref, rtol=rtol, atol=atol)

    # 1) Tiny production-like shape; static python scalars (closure-folded path).
    check(1, S=16, P=8, M=128, w=0.5, rho=0.1)
    # 2) Ragged grid on both axes (P=200 -> 2x128 tiles, M=384 -> 2x256 tiles):
    #    exercises the no-pad / clipped-edge path and the M-outer grid order.
    check(2, S=64, P=200, M=384, w=0.5, rho=0.1, tp=128, tm=256)
    # 3) Traced (learnable-style) w / rho -> SMEM scalar path.
    check(3, S=32, P=8, M=256,
          w=jnp.asarray(0.25, jnp.float32), rho=jnp.asarray(0.05, jnp.float32))
    # 4) bf16 storage (halved HBM bytes), f32 compute inside the kernel.
    check(4, S=32, P=16, M=256, w=0.5, rho=0.1, dtype=jnp.bfloat16,
          rtol=2e-2, atol=2e-2)

    print("KERNEL_OK")
</pallas_src>

<mosaic_0001>
module attributes {stable_mosaic.version = 11 : i64} {
  func.func @_kernel_static(%arg0: i32, %arg1: i32, %arg2: memref<16x8xf32, #tpu.memory_space<vmem>>, %arg3: memref<16x128xf32, #tpu.memory_space<vmem>>, %arg4: memref<8x128xf32, #tpu.memory_space<vmem>>, %arg5: memref<8x128xf32, #tpu.memory_space<vmem>>, %arg6: memref<8x128xf32, #tpu.memory_space<vmem>>) attributes {dimension_semantics = [#tpu.dimension_semantics<parallel>, #tpu.dimension_semantics<parallel>], iteration_bounds = array<i64: 1, 1>, scalar_prefetch = 0 : i64, scratch_operands = 0 : i64, tpu.core_type = #tpu.core_type<tc>, window_params = [{transform_indices = @transform_0, window_bounds = array<i64: 16, 8>}, {transform_indices = @transform_1, window_bounds = array<i64: 16, 128>}, {transform_indices = @transform_2, window_bounds = array<i64: 8, 128>}, {transform_indices = @transform_3, window_bounds = array<i64: 8, 128>}, {transform_indices = @transform_4, window_bounds = array<i64: 8, 128>}]} {
    %c0 = arith.constant 0 : index
    %c0_0 = arith.constant 0 : index
    %0 = vector.load %arg2[%c0, %c0_0] : memref<16x8xf32, #tpu.memory_space<vmem>>, vector<16x8xf32>
    %c0_1 = arith.constant 0 : index
    %c0_2 = arith.constant 0 : index
    %1 = vector.load %arg3[%c0_1, %c0_2] : memref<16x128xf32, #tpu.memory_space<vmem>>, vector<16x128xf32>
    %cst = arith.constant dense<0.000000e+00> : vector<8x128xf32>
    %2 = tpu.matmul %0, %1, %cst {dimension_numbers = #tpu.dot_dimension_numbers<[0], [0], [1], [1], [0, 1, 1, 1], [], []>} : vector<16x8xf32>, vector<16x128xf32>, vector<8x128xf32> -> vector<8x128xf32>
    %c0_3 = arith.constant 0 : index
    %c0_4 = arith.constant 0 : index
    %3 = vector.load %arg4[%c0_3, %c0_4] : memref<8x128xf32, #tpu.memory_space<vmem>>, vector<8x128xf32>
    %c0_5 = arith.constant 0 : index
    %c0_6 = arith.constant 0 : index
    %4 = vector.load %arg5[%c0_5, %c0_6] : memref<8x128xf32, #tpu.memory_space<vmem>>, vector<8x128xf32>
    %cst_7 = arith.constant 1.000000e-01 : f32
    %5 = vector.broadcast %cst_7 : f32 to vector<8x128xf32>
    %6 = arith.mulf %5, %4 : vector<8x128xf32>
    %7 = arith.addf %3, %6 : vector<8x128xf32>
    %cst_8 = arith.constant -2.12314219E-4 : f32
    %8 = vector.broadcast %cst_8 : f32 to vector<8x128xf32>
    %9 = arith.mulf %8, %2 : vector<8x128xf32>
    %cst_9 = arith.constant -5.000000e-02 : f32
    %10 = vector.broadcast %cst_9 : f32 to vector<8x128xf32>
    %11 = arith.addf %9, %10 : vector<8x128xf32>
    %12 = arith.addf %7, %11 : vector<8x128xf32>
    %c0_10 = arith.constant 0 : index
    %c0_11 = arith.constant 0 : index
    %13 = vector.load %arg6[%c0_10, %c0_11] : memref<8x128xf32, #tpu.memory_space<vmem>>, vector<8x128xf32>
    tpu.vector_store %arg6[%c0_10, %c0_11], %12 {strides = array<i32>} : memref<8x128xf32, #tpu.memory_space<vmem>>, vector<8x128xf32>,
    return
  }
  func.func @transform_0(%arg0: i32, %arg1: i32) -> (i32, i32) {
    %c0_i32 = arith.constant 0 : i32
    %c0_i32_0 = arith.constant 0 : i32
    return %c0_i32, %arg1 : i32, i32
  }
  func.func @transform_1(%arg0: i32, %arg1: i32) -> (i32, i32) {
    %c0_i32 = arith.constant 0 : i32
    %c0_i32_0 = arith.constant 0 : i32
    return %c0_i32, %arg0 : i32, i32
  }
  func.func @transform_2(%arg0: i32, %arg1: i32) -> (i32, i32) {
    %c0_i32 = arith.constant 0 : i32
    return %arg1, %arg0 : i32, i32
  }
  func.func @transform_3(%arg0: i32, %arg1: i32) -> (i32, i32) {
    %c0_i32 = arith.constant 0 : i32
    return %arg1, %arg0 : i32, i32
  }
  func.func @transform_4(%arg0: i32, %arg1: i32) -> (i32, i32) {
    %c0_i32 = arith.constant 0 : i32
    return %arg1, %arg0 : i32, i32
  }
}

</mosaic_0001>

<bundles_post_ra>
// kernel: tpu_custom_call.1
= control target key start
LH: loop header
LB: loop body
LE: loop exit
PB: predicated region body
PF: predicated region fallthrough
CT: control target
= control target key end

     0   :  { %v192_v2 = vmov 0.0|0.0   ;;  %s251_s0 = inlined_call_operand.vmem [shape: f32[16,8], index: 0, kind: input, shape index: {}]   ;;  %s252_s1 = inlined_call_operand.vmem [shape: f32[16,128], index: 1, kind: input, shape index: {}]   ;;  %s253_s2 = inlined_call_operand.vmem [shape: f32[8,128], index: 2, kind: input, shape index: {}]   ;;  %s254_s3 = inlined_call_operand.vmem [shape: f32[8,128], index: 3, kind: input, shape index: {}]   ;;  %s255_s4 = inlined_call_operand.hbm [shape: f32[8,128], index: 4, kind: output, shape index: {}]  }
   0x1   :  { %v18_v0 = vld [vmem:[%s251_s0] sm:$0xff]  ;;  %161 = vmatprep.subr.bf16.mxu0 %v192_v2  ;;  %v21_v3 = vld [vmem:[%s252_s1 + $0x8] sm:$0xff] }
   0x2   :  { %v20_v1 = vld [vmem:[%s252_s1] sm:$0xff]  ;;  %22 = vxpose.xlu0.b32.start [1/2] (short) (narrow) %v18_v0, 8 }
   0x3   :  { %9 = vsyncpa [#allocation3], 0  ;;  %v19_v4 = vld [vmem:[%s251_s0 + $0x8] sm:$0xff]  ;;  %v162_v5 = vpack.c.bf16 %v21_v3, %v20_v1  ;;  %vm193_vm0 = vmmov 0   ;;  %v194_v6 = vmov 0.0   ;;  %vm54_vm1 = vcmask 130048  }
   0x4   :  { %158 = vmatprep.mubr.msk.f32.mxu0 %vm193_vm0, %v194_v6  ;;  %v129_v8 = vld [vmem:[%s254_s3] sm:$0xff]  ;;  %s195_s0 = smov [#allocation2]  }
   0x5   :  { %163 = vmatpush3.bf16.msra.mxu0 %v162_v5  ;;  %v130_v9 = vmul.f32 0.1, %v129_v8  ;;  %v128_v10 = vld [vmem:[%s253_s2] sm:$0xff]  ;;  %s142_s26 = sshll.u32 %s195_s0, 4  ;;  %s143_s26 = int_to_ptr.vmem [resolvable:$true] %s142_s26 }
   0x6   :  { %23 = vxpose.xlu0.b32.end [2/2] (short) (narrow) %v19_v4, 8  ;;  %s168_s27 = scalar_lea.vmem %s143_s26, 128  ;;  %p173_p1 = scmp.lt.s32.totalorder %s143_s26, %s143_s26 }
   0x7   :  { %v131_v14 = vadd.f32 %v130_v9, %v128_v10  ;;  %p169_p0 = scmp.ne.s32.totalorder %s143_s26, %s168_s27  ;;  %p174_p2 = scmp.lt.s32.totalorder %s168_s27, %s168_s27 }
   0x9   :  { %p175_p3 = por %p174_p2, %p173_p1 }
   0xb   :  { %p176_p4 = pnand %p175_p3, %p169_p0 }
  0x82   :  { %v38_v7 = vpop.trf.xlu0 }
  0x83   :  { %159 = vmatmul.mubr.msk.f32.vlgmr.msra.gmra.mrb[0].mxu0 %vm54_vm1, %v38_v7 }
 0x156   :  { %v124_v11 = vpop.f32.mrb[0].mxu0 }
 0x157   :  { %v132_v12 = vmul.f32 -0.00021231422, %v124_v11  ;;  %v160_v13 = vpop.f32.mrb[1].mxu0 }
 0x159   :  { %v133_v15 = vadd.f32 -0.05, %v132_v12 }
 0x15b   :  { %v134_v16 = vadd.f32 %v133_v15, %v131_v14 }
 0x15d   :  { %135 = vst [vmem:[#allocation2] sm:$0xff] %v134_v16 }
 0x15e   :  { %179 = shalt.err (!%p176_p4)
}
 0x15f   :  { %s180_s2 = scalar_lea.hbm %s255_s4, 128 }
 0x160   :  { %p181_p5 = scmp.ne.s32.totalorder %s255_s4, %s180_s2  ;;  %p184_p6 = scmp.lt.u32.totalorder %s180_s2, %s255_s4 }
 0x162   :  { %p186_p7 = pnand %p184_p6, %p181_p5 }
 0x164   :  { %189 = shalt.err (!%p186_p7)
}
 0x165   :  { %145 = dma.vmem_to_hbm [thread:$0]  %s143_s26, 128, %s255_s4, [#allocation3]  }
 0x166   :  { %190 = dma.done.wait [#allocation3], 128  }
 0x167   :  { %191 = vsyncadd [#allocation3], 4294967168 }
 0x168   :  { %149 = vsyncpa [#allocation3], 1 }

</bundles_post_ra>
